<compile_context>
chip_gen: v6e
topology: v6e:2x2x1
jax: 0.10.0
libtpu: 0.0.40
codegen_flags: <defaults>
</compile_context>

<pallas_src>
import functools

import jax
import jax.numpy as jnp
from jax.experimental import pallas as pl
from jax.experimental.pallas import tpu as pltpu


def _round_up(n, m):
    return (n + m - 1) // m * m


def highway_kernel(num_layers, size_p, x_ref, w_ref, b_ref, o_ref):
    """All highway layers fused; one packed bf16 matmul per layer.

    x_ref: [tile_b, size_p]                  f32 activation tile
    w_ref: [num_layers, size_p, 3*size_p]    bf16 packed (gate|nonlinear|linear)
    b_ref: [num_layers, 1, 3*size_p]         f32 packed biases
    o_ref: [tile_b, size_p]                  f32 output tile
    """

    def layer_step(layer, x):
        # Single MXU pass per layer: bf16 inputs, f32 accumulation.
        y = jnp.dot(x.astype(jnp.bfloat16), w_ref[layer],
                    preferred_element_type=jnp.float32)
        y = y + b_ref[layer]                           # [1, 3*size_p] broadcast
        gate = jax.nn.sigmoid(y[:, :size_p])           # EUP
        nonlinear = jax.nn.relu(y[:, size_p:2 * size_p])
        linear = y[:, 2 * size_p:]
        # x = gate*nonlinear + (1-gate)*linear, refactored to save a multiply.
        return linear + gate * (nonlinear - linear)

    x = x_ref[...].astype(jnp.float32)
    if num_layers <= 8:
        for layer in range(num_layers):                # static unroll: small L
            x = layer_step(layer, x)
    else:                                              # bound live ranges: big L
        x = jax.lax.fori_loop(0, num_layers, layer_step, x)
    o_ref[...] = x.astype(o_ref.dtype)


def init_highway_params(key, size, num_layers, dtype=jnp.float32):
    """nn.Linear-style init, weights already in x @ W orientation.

    Weights: [num_layers, size, size]; biases: [num_layers, size].
    """
    bound = 1.0 / jnp.sqrt(jnp.asarray(size, jnp.float32))
    names = ("gate_w", "gate_b", "nl_w", "nl_b", "lin_w", "lin_b")
    shapes = ((num_layers, size, size), (num_layers, size),
              (num_layers, size, size), (num_layers, size),
              (num_layers, size, size), (num_layers, size))
    keys = jax.random.split(key, len(names))
    params = {}
    for k, name, shp in zip(keys, names, shapes):
        params[name] = jax.random.uniform(
            k, shp, dtype=dtype, minval=-bound, maxval=bound)
    return params


def pack_highway_params(params, size, size_p):
    """Zero-pad to size_p and concat (gate|nonlinear|linear) along lanes."""
    pad = size_p - size

    def pad_w(w):   # [L, size, size] -> [L, size_p, size_p]
        return jnp.pad(w, ((0, 0), (0, pad), (0, pad)))

    def pad_b(b):   # [L, size] -> [L, size_p]
        return jnp.pad(b, ((0, 0), (0, pad)))

    w_packed = jnp.concatenate(
        [pad_w(params["gate_w"]), pad_w(params["nl_w"]), pad_w(params["lin_w"])],
        axis=-1).astype(jnp.bfloat16)
    b_packed = jnp.concatenate(
        [pad_b(params["gate_b"]), pad_b(params["nl_b"]), pad_b(params["lin_b"])],
        axis=-1).astype(jnp.float32)[:, None, :]        # [L, 1, 3*size_p]
    return w_packed, b_packed


@functools.partial(jax.jit, static_argnames=("num_layers", "tile_b"))
def highway_forward(x, params, *, num_layers, tile_b=256):
    """Pallas-backed Highway forward.  x: [batch, size]."""
    batch, size = x.shape
    size_p = _round_up(max(size, 128), 128)             # lane-dense feature dim
    tile_b = min(tile_b, _round_up(batch, 8))           # batch tile, mult. of 8
    batch_p = _round_up(batch, tile_b)

    w_packed, b_packed = pack_highway_params(params, size, size_p)
    x_p = jnp.pad(x.astype(jnp.float32),
                  ((0, batch_p - batch), (0, size_p - size)))

    # Advisory cost hint for XLA's scheduler around the custom call.
    n3 = 3 * size_p
    cost = pl.CostEstimate(
        flops=2 * batch_p * size_p * n3 * num_layers,
        transcendentals=batch_p * size_p * num_layers,            # sigmoid exp
        bytes_accessed=(x_p.size * 4 + batch_p * size_p * 4
                        + w_packed.size * 2 + b_packed.size * 4))

    # Leave headroom over the resident weights + double-buffered act tiles.
    vmem_need = (w_packed.size * 2 + b_packed.size * 4
                 + 4 * tile_b * size_p * 4 + (1 << 20))
    vmem_limit = min(128 << 20, max(32 << 20, 2 * vmem_need))

    kernel = functools.partial(highway_kernel, num_layers, size_p)
    out_p = pl.pallas_call(
        kernel,
        out_shape=jax.ShapeDtypeStruct((batch_p, size_p), jnp.float32),
        grid=(batch_p // tile_b,),
        in_specs=[
            # activations: tiled over batch, double-buffered by the pipeline
            pl.BlockSpec((tile_b, size_p), lambda i: (i, 0)),
            # packed weights / biases: constant block index -> loaded once,
            # stay VMEM-resident across all batch tiles
            pl.BlockSpec((num_layers, size_p, 3 * size_p), lambda i: (0, 0, 0)),
            pl.BlockSpec((num_layers, 1, 3 * size_p), lambda i: (0, 0, 0)),
        ],
        out_specs=pl.BlockSpec((tile_b, size_p), lambda i: (i, 0)),
        compiler_params=pltpu.CompilerParams(
            dimension_semantics=("parallel",),
            vmem_limit_bytes=vmem_limit),
        cost_estimate=cost,
    )(x_p, w_packed, b_packed)
    return out_p[:batch, :size].astype(x.dtype)


def highway_reference(x, params, num_layers):
    """Plain-JAX f32 reference mirroring the PyTorch forward (f = ReLU)."""
    x = x.astype(jnp.float32)
    for layer in range(num_layers):
        gate = jax.nn.sigmoid(x @ params["gate_w"][layer] + params["gate_b"][layer])
        nonlinear = jax.nn.relu(x @ params["nl_w"][layer] + params["nl_b"][layer])
        linear = x @ params["lin_w"][layer] + params["lin_b"][layer]
        x = gate * nonlinear + (1.0 - gate) * linear
    return x


if __name__ == "__main__":
    batch = 8
    size = 32
    num_layers = 2

    key = jax.random.PRNGKey(0)
    kx, kp = jax.random.split(key)

    x = jax.random.normal(kx, (batch, size), dtype=jnp.float32)
    params = init_highway_params(kp, size, num_layers)

    out = highway_forward(x, params, num_layers=num_layers)
    out = jax.block_until_ready(out)

    ref = highway_reference(x, params, num_layers)
    assert out.shape == (batch, size)
    # Tolerance loosened vs. the pure-f32 version: matmul inputs are bf16.
    assert jnp.allclose(out, ref, atol=2e-2, rtol=2e-2), (
        float(jnp.max(jnp.abs(out - ref))))

    print("KERNEL_OK")
</pallas_src>

<mosaic_0001>
module attributes {stable_mosaic.version = 11 : i64} {
  func.func @highway_kernel(%arg0: i32, %arg1: memref<8x128xf32, #tpu.memory_space<vmem>>, %arg2: memref<2x128x384xbf16, #tpu.memory_space<vmem>>, %arg3: memref<2x1x384xf32, #tpu.memory_space<vmem>>, %arg4: memref<8x128xf32, #tpu.memory_space<vmem>>) attributes {dimension_semantics = [#tpu.dimension_semantics<parallel>], iteration_bounds = array<i64: 1>, scalar_prefetch = 0 : i64, scratch_operands = 0 : i64, tpu.core_type = #tpu.core_type<tc>, window_params = [{transform_indices = @transform_0, window_bounds = array<i64: 8, 128>}, {pipeline_mode = #tpu.pipeline_mode<synchronous>, transform_indices = @transform_1, window_bounds = array<i64: 2, 128, 384>}, {pipeline_mode = #tpu.pipeline_mode<synchronous>, transform_indices = @transform_2, window_bounds = array<i64: 2, 1, 384>}, {transform_indices = @transform_3, window_bounds = array<i64: 8, 128>}]} {
    %c0 = arith.constant 0 : index
    %c0_0 = arith.constant 0 : index
    %0 = vector.load %arg1[%c0, %c0_0] : memref<8x128xf32, #tpu.memory_space<vmem>>, vector<8x128xf32>
    %1 = arith.truncf %0 : vector<8x128xf32> to vector<8x128xbf16>
    %c0_1 = arith.constant 0 : index
    %c0_2 = arith.constant 0 : index
    %c0_3 = arith.constant 0 : index
    %2 = vector.load %arg2[%c0_1, %c0_2, %c0_3] : memref<2x128x384xbf16, #tpu.memory_space<vmem>>, vector<1x128x384xbf16>
    %3 = vector.shape_cast %2 : vector<1x128x384xbf16> to vector<128x384xbf16>
    %cst = arith.constant dense<0.000000e+00> : vector<8x384xf32>
    %4 = tpu.matmul %1, %3, %cst {dimension_numbers = #tpu.dot_dimension_numbers<[1], [0], [0], [1], [0, 0, 1, 1], [], []>} : vector<8x128xbf16>, vector<128x384xbf16>, vector<8x384xf32> -> vector<8x384xf32>
    %c0_4 = arith.constant 0 : index
    %c0_5 = arith.constant 0 : index
    %c0_6 = arith.constant 0 : index
    %5 = vector.load %arg3[%c0_4, %c0_5, %c0_6] : memref<2x1x384xf32, #tpu.memory_space<vmem>>, vector<1x1x384xf32>
    %6 = vector.shape_cast %5 : vector<1x1x384xf32> to vector<1x384xf32>
    %7 = vector.broadcast %6 : vector<1x384xf32> to vector<8x384xf32>
    %8 = arith.addf %4, %7 : vector<8x384xf32>
    %9 = vector.extract_strided_slice %8 {offsets = [0, 0], sizes = [8, 128], strides = [1, 1]} : vector<8x384xf32> to vector<8x128xf32>
    %10 = arith.negf %9 : vector<8x128xf32>
    %11 = math.exp %10 : vector<8x128xf32>
    %cst_7 = arith.constant 1.000000e+00 : f32
    %12 = vector.broadcast %cst_7 : f32 to vector<8x128xf32>
    %13 = arith.addf %12, %11 : vector<8x128xf32>
    %14 = arith.divf %12, %13 : vector<8x128xf32>
    %15 = vector.extract_strided_slice %8 {offsets = [0, 128], sizes = [8, 128], strides = [1, 1]} : vector<8x384xf32> to vector<8x128xf32>
    %cst_8 = arith.constant 0.000000e+00 : f32
    %16 = vector.broadcast %cst_8 : f32 to vector<8x128xf32>
    %17 = arith.maximumf %15, %16 : vector<8x128xf32>
    %18 = vector.extract_strided_slice %8 {offsets = [0, 256], sizes = [8, 128], strides = [1, 1]} : vector<8x384xf32> to vector<8x128xf32>
    %19 = arith.subf %17, %18 : vector<8x128xf32>
    %20 = arith.mulf %14, %19 : vector<8x128xf32>
    %21 = arith.addf %18, %20 : vector<8x128xf32>
    %22 = arith.truncf %21 : vector<8x128xf32> to vector<8x128xbf16>
    %c1 = arith.constant 1 : index
    %c0_9 = arith.constant 0 : index
    %c0_10 = arith.constant 0 : index
    %23 = vector.load %arg2[%c1, %c0_9, %c0_10] : memref<2x128x384xbf16, #tpu.memory_space<vmem>>, vector<1x128x384xbf16>
    %24 = vector.shape_cast %23 : vector<1x128x384xbf16> to vector<128x384xbf16>
    %cst_11 = arith.constant dense<0.000000e+00> : vector<8x384xf32>
    %25 = tpu.matmul %22, %24, %cst_11 {dimension_numbers = #tpu.dot_dimension_numbers<[1], [0], [0], [1], [0, 0, 1, 1], [], []>} : vector<8x128xbf16>, vector<128x384xbf16>, vector<8x384xf32> -> vector<8x384xf32>
    %c1_12 = arith.constant 1 : index
    %c0_13 = arith.constant 0 : index
    %c0_14 = arith.constant 0 : index
    %26 = vector.load %arg3[%c1_12, %c0_13, %c0_14] : memref<2x1x384xf32, #tpu.memory_space<vmem>>, vector<1x1x384xf32>
    %27 = vector.shape_cast %26 : vector<1x1x384xf32> to vector<1x384xf32>
    %28 = vector.broadcast %27 : vector<1x384xf32> to vector<8x384xf32>
    %29 = arith.addf %25, %28 : vector<8x384xf32>
    %30 = vector.extract_strided_slice %29 {offsets = [0, 0], sizes = [8, 128], strides = [1, 1]} : vector<8x384xf32> to vector<8x128xf32>
    %31 = arith.negf %30 : vector<8x128xf32>
    %32 = math.exp %31 : vector<8x128xf32>
    %cst_15 = arith.constant 1.000000e+00 : f32
    %33 = vector.broadcast %cst_15 : f32 to vector<8x128xf32>
    %34 = arith.addf %33, %32 : vector<8x128xf32>
    %35 = arith.divf %33, %34 : vector<8x128xf32>
    %36 = vector.extract_strided_slice %29 {offsets = [0, 128], sizes = [8, 128], strides = [1, 1]} : vector<8x384xf32> to vector<8x128xf32>
    %cst_16 = arith.constant 0.000000e+00 : f32
    %37 = vector.broadcast %cst_16 : f32 to vector<8x128xf32>
    %38 = arith.maximumf %36, %37 : vector<8x128xf32>
    %39 = vector.extract_strided_slice %29 {offsets = [0, 256], sizes = [8, 128], strides = [1, 1]} : vector<8x384xf32> to vector<8x128xf32>
    %40 = arith.subf %38, %39 : vector<8x128xf32>
    %41 = arith.mulf %35, %40 : vector<8x128xf32>
    %42 = arith.addf %39, %41 : vector<8x128xf32>
    %c0_17 = arith.constant 0 : index
    %c0_18 = arith.constant 0 : index
    %43 = vector.load %arg4[%c0_17, %c0_18] : memref<8x128xf32, #tpu.memory_space<vmem>>, vector<8x128xf32>
    tpu.vector_store %arg4[%c0_17, %c0_18], %42 {strides = array<i32>} : memref<8x128xf32, #tpu.memory_space<vmem>>, vector<8x128xf32>,
    return
  }
  func.func @transform_0(%arg0: i32) -> (i32, i32) {
    %c0_i32 = arith.constant 0 : i32
    %c0_i32_0 = arith.constant 0 : i32
    return %arg0, %c0_i32 : i32, i32
  }
  func.func @transform_1(%arg0: i32) -> (i32, i32, i32) {
    %c0_i32 = arith.constant 0 : i32
    %c0_i32_0 = arith.constant 0 : i32
    %c0_i32_1 = arith.constant 0 : i32
    %c0_i32_2 = arith.constant 0 : i32
    return %c0_i32, %c0_i32_0, %c0_i32_1 : i32, i32, i32
  }
  func.func @transform_2(%arg0: i32) -> (i32, i32, i32) {
    %c0_i32 = arith.constant 0 : i32
    %c0_i32_0 = arith.constant 0 : i32
    %c0_i32_1 = arith.constant 0 : i32
    %c0_i32_2 = arith.constant 0 : i32
    return %c0_i32, %c0_i32_0, %c0_i32_1 : i32, i32, i32
  }
  func.func @transform_3(%arg0: i32) -> (i32, i32) {
    %c0_i32 = arith.constant 0 : i32
    %c0_i32_0 = arith.constant 0 : i32
    return %arg0, %c0_i32 : i32, i32
  }
}

</mosaic_0001>

<bundles_post_ra>
// kernel: highway_forward.1
= control target key start
LH: loop header
LB: loop body
LE: loop exit
PB: predicated region body
PF: predicated region fallthrough
CT: control target
= control target key end

     0   :  { %v811_v2 = vmov 0.0   ;;  %v812_v3 = vmov 0   ;;  %vm813_vm0 = vmmov 0   ;;  %s1011_s0 = inlined_call_operand.vmem [shape: f32[8,128], index: 0, kind: input, shape index: {}]   ;;  %s1012_s1 = inlined_call_operand.vmem [shape: bf16[2,128,384], index: 1, kind: input, shape index: {}]   ;;  %s1013_s2 = inlined_call_operand.vmem [shape: f32[2,1,384], index: 2, kind: input, shape index: {}]   ;;  %s1014_s3 = inlined_call_operand.hbm [shape: f32[8,128], index: 3, kind: output, shape index: {}]  }
   0x1   :  { %v717_v0 = vld [vmem:[%s1012_s1 + $0xac] ss:$12 sps:$4 sm:$0xff]   ;;  %v719_v1 = vld [vmem:[%s1012_s1 + $0xa8] ss:$12 sps:$4 sm:$0xff]   ;;  %673 = vmatprep.subr.bf16.mxu1 %v811_v2  ;;  %227 = vmatprep.mubr.bf16.mxu0 %v812_v3  ;;  %v722_v5 = vld [vmem:[%s1012_s1 + $0x90] ss:$12 sps:$4 sm:$0xff]  }
   0x2   :  { %195 = vmatprep.subr.bf16.mxu0 %v717_v0  ;;  %v720_v4 = vld [vmem:[%s1012_s1 + $0x94] ss:$12 sps:$4 sm:$0xff]   ;;  %689 = vmatprep.mubr.msk.bf16.mxu1 %vm813_vm0, %v811_v2  ;;  %v723_v6 = vld [vmem:[%s1012_s1 + $0xb0] ss:$12 sps:$4 sm:$0xff]   ;;  %v727_v8 = vld [vmem:[%s1012_s1 + $0x98] ss:$12 sps:$4 sm:$0xff]  }
   0x3   :  { %196 = vmatpush1.bf16.msra.mxu0 %v719_v1  ;;  %v724_v7 = vld [vmem:[%s1012_s1 + $0x7c] ss:$12 sps:$4 sm:$0xff]   ;;  %674 = vmatpush3.bf16.msra.mxu1 %v723_v6  ;;  %v726_v9 = vld [vmem:[%s1012_s1 + $0x78] ss:$12 sps:$4 sm:$0xff]   ;;  %v731_v11 = vld [vmem:[%s1012_s1 + $0x80] ss:$12 sps:$4 sm:$0xff]  }
   0x4   :  { %197 = vmatprep.subr.bf16.mxu0 %v720_v4  ;;  %675 = vmatprep.subr.bf16.mxu1 %v811_v2  ;;  %v728_v10 = vld [vmem:[%s1012_s1 + $0x64] ss:$12 sps:$4 sm:$0xff]   ;;  %v730_v12 = vld [vmem:[%s1012_s1 + $0x60] ss:$12 sps:$4 sm:$0xff]   ;;  %v735_v14 = vld [vmem:[%s1012_s1 + $0x68] ss:$12 sps:$4 sm:$0xff]  }
   0x5   :  { %v732_v13 = vld [vmem:[%s1012_s1 + $0x4c] ss:$12 sps:$4 sm:$0xff]   ;;  %v734_v15 = vld [vmem:[%s1012_s1 + $0x48] ss:$12 sps:$4 sm:$0xff]   ;;  %v738_v17 = vld [vmem:[%s1012_s1 + $0x30] ss:$12 sps:$4 sm:$0xff]  }
   0x6   :  { %v736_v16 = vld [vmem:[%s1012_s1 + $0x34] ss:$12 sps:$4 sm:$0xff]   ;;  %v739_v18 = vld [vmem:[%s1012_s1 + $0x50] ss:$12 sps:$4 sm:$0xff]   ;;  %v743_v20 = vld [vmem:[%s1012_s1 + $0x38] ss:$12 sps:$4 sm:$0xff]  }
   0x7   :  { %198 = vmatpush1.bf16.msra.mxu0 %v722_v5  ;;  %676 = vmatpush3.bf16.msra.mxu1 %v727_v8  ;;  %v740_v19 = vld [vmem:[%s1012_s1 + $0x1c] ss:$12 sps:$4 sm:$0xff]   ;;  %v742_v21 = vld [vmem:[%s1012_s1 + $0x18] ss:$12 sps:$4 sm:$0xff]   ;;  %v747_v23 = vld [vmem:[%s1012_s1 + $0x20] ss:$12 sps:$4 sm:$0xff]  }
   0x8   :  { %199 = vmatprep.subr.bf16.mxu0 %v724_v7  ;;  %677 = vmatprep.subr.bf16.mxu1 %v811_v2  ;;  %v744_v22 = vld [vmem:[%s1012_s1 + $0x4] ss:$12 sps:$4 sm:$0xff]   ;;  %v746_v24 = vld [vmem:[%s1012_s1] ss:$12 sps:$4 sm:$0xff]   ;;  %v748_v26 = vld [vmem:[%s1012_s1 + $0x8] ss:$12 sps:$4 sm:$0xff]  }
   0x9   :  { %v16_v25 = vld [vmem:[%s1011_s0] sm:$0xff] }
   0xa   :  { %v17_v27 = vpack.c.bf16 %v16_v25, %v16_v25 }
   0xb   :  { %200 = vmatpush1.bf16.msra.mxu0 %v726_v9  ;;  %678 = vmatpush3.bf16.msra.mxu1 %v731_v11 }
   0xc   :  { %201 = vmatprep.subr.bf16.mxu0 %v728_v10  ;;  %679 = vmatprep.subr.bf16.mxu1 %v811_v2 }
   0xf   :  { %202 = vmatpush1.bf16.msra.mxu0 %v730_v12  ;;  %680 = vmatpush3.bf16.msra.mxu1 %v735_v14 }
  0x10   :  { %203 = vmatprep.subr.bf16.mxu0 %v732_v13  ;;  %681 = vmatprep.subr.bf16.mxu1 %v811_v2 }
  0x13   :  { %204 = vmatpush1.bf16.msra.mxu0 %v734_v15  ;;  %682 = vmatpush3.bf16.msra.mxu1 %v739_v18 }
  0x14   :  { %205 = vmatprep.subr.bf16.mxu0 %v736_v16  ;;  %683 = vmatprep.subr.bf16.mxu1 %v811_v2 }
  0x17   :  { %206 = vmatpush1.bf16.msra.mxu0 %v738_v17  ;;  %684 = vmatpush3.bf16.msra.mxu1 %v743_v20 }
  0x18   :  { %207 = vmatprep.subr.bf16.mxu0 %v740_v19  ;;  %685 = vmatprep.subr.bf16.mxu1 %v811_v2 }
  0x1b   :  { %208 = vmatpush1.bf16.msra.mxu0 %v742_v21  ;;  %686 = vmatpush3.bf16.msra.mxu1 %v747_v23 }
  0x1c   :  { %209 = vmatprep.subr.bf16.mxu0 %v744_v22  ;;  %687 = vmatprep.subr.bf16.mxu1 %v811_v2 }
  0x1d   :  { %8 = vsyncpa [#allocation3], 0  ;;  %v751_v28 = vld [vmem:[%s1012_s1 + $0x16c] ss:$12 sps:$4 sm:$0xff]   ;;  %v749_v29 = vld [vmem:[%s1012_s1 + $0x168] ss:$12 sps:$4 sm:$0xff]   ;;  %v52_v52 = vlaneseq }
  0x1e   :  { %v752_v30 = vld [vmem:[%s1012_s1 + $0x170] ss:$12 sps:$4 sm:$0xff]   ;;  %v755_v31 = vld [vmem:[%s1012_s1 + $0x154] ss:$12 sps:$4 sm:$0xff]   ;;  %v756_v33 = vld [vmem:[%s1012_s1 + $0x158] ss:$12 sps:$4 sm:$0xff]  }
  0x1f   :  { %210 = vmatpush1.bf16.msra.mxu0 %v746_v24  ;;  %688 = vmatpush3.bf16.msra.mxu1 %v748_v26  ;;  %v753_v32 = vld [vmem:[%s1012_s1 + $0x150] ss:$12 sps:$4 sm:$0xff]   ;;  %v757_v35 = vld [vmem:[%s1012_s1 + $0x138] ss:$12 sps:$4 sm:$0xff]   ;;  %v760_v36 = vld [vmem:[%s1012_s1 + $0x140] ss:$12 sps:$4 sm:$0xff]  }
  0x20   :  { %693 = vmatprep.subr.bf16.mxu1 %v811_v2  ;;  %466 = vmatprep.subr.bf16.mxu0 %v751_v28  ;;  %v759_v34 = vld [vmem:[%s1012_s1 + $0x13c] ss:$12 sps:$4 sm:$0xff]   ;;  %v763_v37 = vld [vmem:[%s1012_s1 + $0x124] ss:$12 sps:$4 sm:$0xff]   ;;  %v761_v38 = vld [vmem:[%s1012_s1 + $0x120] ss:$12 sps:$4 sm:$0xff]  }
  0x21   :  { %v764_v39 = vld [vmem:[%s1012_s1 + $0x128] ss:$12 sps:$4 sm:$0xff]   ;;  %v767_v40 = vld [vmem:[%s1012_s1 + $0x10c] ss:$12 sps:$4 sm:$0xff]   ;;  %v768_v42 = vld [vmem:[%s1012_s1 + $0x110] ss:$12 sps:$4 sm:$0xff]  }
  0x22   :  { %228 = vmatmul.mubr.bf16.vlgmr.msra.gmra.mxu0 %v17_v27  ;;  %690 = vmatmul.mubr.bf16.vlgmr.msra.gmra.mxu1 %v17_v27  ;;  %v765_v41 = vld [vmem:[%s1012_s1 + $0x108] ss:$12 sps:$4 sm:$0xff]   ;;  %v769_v44 = vld [vmem:[%s1012_s1 + $0xf0] ss:$12 sps:$4 sm:$0xff]   ;;  %v772_v45 = vld [vmem:[%s1012_s1 + $0xf8] ss:$12 sps:$4 sm:$0xff]  }
  0x23   :  { %498 = vmatprep.mubr.bf16.mxu0 %v812_v3  ;;  %709 = vmatprep.mubr.msk.bf16.mxu1 %vm813_vm0, %v811_v2  ;;  %v771_v43 = vld [vmem:[%s1012_s1 + $0xf4] ss:$12 sps:$4 sm:$0xff]   ;;  %v775_v46 = vld [vmem:[%s1012_s1 + $0xdc] ss:$12 sps:$4 sm:$0xff]   ;;  %v773_v47 = vld [vmem:[%s1012_s1 + $0xd8] ss:$12 sps:$4 sm:$0xff]  }
  0x24   :  { %467 = vmatpush1.bf16.msra.mxu0 %v749_v29  ;;  %694 = vmatpush3.bf16.msra.mxu1 %v752_v30  ;;  %v776_v48 = vld [vmem:[%s1012_s1 + $0xe0] ss:$12 sps:$4 sm:$0xff]   ;;  %v779_v49 = vld [vmem:[%s1012_s1 + $0xc4] ss:$12 sps:$4 sm:$0xff]   ;;  %v780_v51 = vld [vmem:[%s1012_s1 + $0xc8] ss:$12 sps:$4 sm:$0xff]  }
  0x25   :  { %695 = vmatprep.subr.bf16.mxu1 %v811_v2  ;;  %468 = vmatprep.subr.bf16.mxu0 %v755_v31  ;;  %v777_v50 = vld [vmem:[%s1012_s1 + $0xc0] ss:$12 sps:$4 sm:$0xff]   ;;  %v53_v53 = vshrl.u32 %v52_v52, 7 }
  0x26   :  { %v50_v55 = vld [vmem:[%s1013_s2] sm:$0x7]  ;;  %v629_v17 = vld [vmem:[%s1013_s2 + $0x3] sm:$0x7]  ;;  %s814_s2 = smov [#allocation2]  }
  0x27   :  { %v54_v54 = vsub.s32 0, %v53_v53  ;;  %v58_v3 = vsub.s32 1, %v53_v53  ;;  %v62_v7 = vsub.s32 2, %v53_v53  ;;  %s564_s30 = sshll.u32 %s814_s2, 4  ;;  %s565_s30 = int_to_ptr.vmem [resolvable:$true] %s564_s30 }
  0x28   :  { %469 = vmatpush1.bf16.msra.mxu0 %v753_v32  ;;  %696 = vmatpush3.bf16.msra.mxu1 %v756_v33  ;;  %s789_s4 = scalar_lea.vmem %s565_s30, 128  ;;  %p794_p1 = scmp.lt.s32.totalorder %s565_s30, %s565_s30 }
  0x29   :  { %697 = vmatprep.subr.bf16.mxu1 %v811_v2  ;;  %470 = vmatprep.subr.bf16.mxu0 %v759_v34  ;;  %v55_v56 = vrot.slane %v50_v55, %v54_v54  ;;  %v59_v6 = vrot.slane %v50_v55, %v58_v3  ;;  %v63_v9 = vrot.slane %v50_v55, %v62_v7  ;;  %p790_p0 = scmp.ne.s32.totalorder %s565_s30, %s789_s4  ;;  %p795_p2 = scmp.lt.s32.totalorder %s789_s4, %s789_s4 }
  0x2a   :  { %v326_v18 = vrot.slane %v629_v17, %v54_v54  ;;  %v330_v31 = vrot.slane %v629_v17, %v58_v3  ;;  %v334_v33 = vrot.slane %v629_v17, %v62_v7 }
  0x2b   :  { %p796_p3 = por %p795_p2, %p794_p1 }
  0x2c   :  { %471 = vmatpush1.bf16.msra.mxu0 %v757_v35  ;;  %698 = vmatpush3.bf16.msra.mxu1 %v760_v36 }
  0x2d   :  { %699 = vmatprep.subr.bf16.mxu1 %v811_v2  ;;  %472 = vmatprep.subr.bf16.mxu0 %v763_v37  ;;  %p797_p4 = pnand %p796_p3, %p790_p0 }
  0x30   :  { %473 = vmatpush1.bf16.msra.mxu0 %v761_v38  ;;  %700 = vmatpush3.bf16.msra.mxu1 %v764_v39 }
  0x31   :  { %701 = vmatprep.subr.bf16.mxu1 %v811_v2  ;;  %474 = vmatprep.subr.bf16.mxu0 %v767_v40 }
  0x34   :  { %475 = vmatpush1.bf16.msra.mxu0 %v765_v41  ;;  %702 = vmatpush3.bf16.msra.mxu1 %v768_v42 }
  0x35   :  { %703 = vmatprep.subr.bf16.mxu1 %v811_v2  ;;  %476 = vmatprep.subr.bf16.mxu0 %v771_v43 }
  0x38   :  { %477 = vmatpush1.bf16.msra.mxu0 %v769_v44  ;;  %704 = vmatpush3.bf16.msra.mxu1 %v772_v45 }
  0x39   :  { %705 = vmatprep.subr.bf16.mxu1 %v811_v2  ;;  %478 = vmatprep.subr.bf16.mxu0 %v775_v46 }
  0x3c   :  { %479 = vmatpush1.bf16.msra.mxu0 %v773_v47  ;;  %706 = vmatpush3.bf16.msra.mxu1 %v776_v48 }
  0x3d   :  { %707 = vmatprep.subr.bf16.mxu1 %v811_v2  ;;  %480 = vmatprep.subr.bf16.mxu0 %v779_v49 }
  0x40   :  { %481 = vmatpush1.bf16.msra.mxu0 %v777_v50  ;;  %708 = vmatpush3.bf16.msra.mxu1 %v780_v51 }
  0xe2   :  { %v229_v57 = vpop.f32.mrf.mxu0  ;;  %v270_v60 = vpop.f32.mrf.mxu1 }
  0xe3   :  { %v230_v58 = vadd.f32 %v229_v57, %v55_v56  ;;  %v271_v11 = vadd.f32 %v270_v60, %v63_v9 }
  0xe4   :  { %v231_v59 = vpop.f32.mrf.mxu0  ;;  %v691_v63 = vpop.f32.mrf.mxu1 }
  0xe5   :  { %v596_v61 = vmul.f32 -1.442695, %v230_v58  ;;  %v232_v8 = vadd.f32 %v231_v59, %v59_v6 }
  0xe6   :  { %v233_v62 = vpop.f32.mrf.mxu0  ;;  %v273_v1 = vpop.f32.mrf.mxu1 }
  0xe7   :  { %781 = vpow2.f32 %v596_v61  ;;  %v282_v10 = vmax.f32 %v232_v8, 0.0 }
  0xe8   :  { %v234_v0 = vpop.f32.mrf.mxu0  ;;  %v692_v2 = vpop.f32.mrf.mxu1 }
  0xe9   :  { %v283_v12 = vsub.f32 %v282_v10, %v271_v11 }
  0xf4   :  { %v782_v4 = vpop.eup %781 }
  0xf5   :  { %v279_v5 = vadd.f32 1.0, %v782_v4 }
  0xf7   :  { %783 = vrcp.f32 %v279_v5 }
 0x104   :  { %v784_v13 = vpop.eup %783 }
 0x105   :  { %v284_v14 = vmul.f32 %v784_v13, %v283_v12 }
 0x107   :  { %v285_v15 = vadd.f32 %v284_v14, %v271_v11 }
 0x109   :  { %v286_v16 = vpack.c.bf16 %v285_v15, %v285_v15 }
 0x10b   :  { %499 = vmatmul.mubr.bf16.vlgmr.msra.gmra.mxu0 %v286_v16  ;;  %710 = vmatmul.mubr.bf16.vlgmr.msra.gmra.mxu1 %v286_v16 }
 0x1cb   :  { %v500_v19 = vpop.f32.mrf.mxu0  ;;  %v541_v20 = vpop.f32.mrf.mxu1 }
 0x1cc   :  { %v501_v21 = vadd.f32 %v500_v19, %v326_v18  ;;  %v542_v35 = vadd.f32 %v541_v20, %v334_v33 }
 0x1cd   :  { %v502_v22 = vpop.f32.mrf.mxu0  ;;  %v711_v23 = vpop.f32.mrf.mxu1 }
 0x1ce   :  { %v654_v24 = vmul.f32 -1.442695, %v501_v21  ;;  %v503_v32 = vadd.f32 %v502_v22, %v330_v31 }
 0x1cf   :  { %v504_v25 = vpop.f32.mrf.mxu0  ;;  %v544_v26 = vpop.f32.mrf.mxu1 }
 0x1d0   :  { %785 = vpow2.f32 %v654_v24  ;;  %v553_v34 = vmax.f32 %v503_v32, 0.0 }
 0x1d1   :  { %v505_v27 = vpop.f32.mrf.mxu0  ;;  %v712_v28 = vpop.f32.mrf.mxu1 }
 0x1d2   :  { %v554_v36 = vsub.f32 %v553_v34, %v542_v35 }
 0x1dd   :  { %v786_v29 = vpop.eup %785 }
 0x1de   :  { %v550_v30 = vadd.f32 1.0, %v786_v29 }
 0x1e0   :  { %787 = vrcp.f32 %v550_v30 }
 0x1ed   :  { %v788_v37 = vpop.eup %787 }
 0x1ee   :  { %v555_v38 = vmul.f32 %v788_v37, %v554_v36 }
 0x1f0   :  { %v556_v39 = vadd.f32 %v555_v38, %v542_v35 }
 0x1f2   :  { %557 = vst [vmem:[#allocation2] sm:$0xff] %v556_v39 }
 0x1f3   :  { %800 = shalt.err (!%p797_p4)
}
 0x1f4   :  { %567 = dma.vmem_to_hbm [thread:$0]  %s565_s30, 128, %s1014_s3, [#allocation3]  }
 0x1f5   :  { %809 = dma.done.wait [#allocation3], 128  }
 0x1f6   :  { %810 = vsyncadd [#allocation3], 4294967168 }
 0x1f7   :  { %571 = vsyncpa [#allocation3], 1 }

</bundles_post_ra>
